<compile_context>
chip_gen: v6e
topology: v6e:2x2x1
jax: 0.10.0
libtpu: 0.0.40
codegen_flags: <defaults>
</compile_context>

<pallas_src>
import math

import jax
import jax.numpy as jnp
from jax.experimental import pallas as pl
from jax.experimental.pallas import tpu as pltpu


def _round_up(x, m):
    return (x + m - 1) // m * m


def _cdiv(a, b):
    return -(-a // b)


def _make_generator_kernel(use_stash):
    """Build the kernel body.  `use_stash` selects the no-recompute (VMEM logits
    stash) variant vs. the recompute fallback for very large vocabularies."""

    def kernel(x_ref, w_ref, b_ref, o_ref, m_ref, l_ref, *maybe_stash):
        # x_ref : (TM, d_model)    bf16 row tile (resident across phase & vocab axes)
        # w_ref : (d_model, TN)    bf16 weight tile (pre-transposed in the wrapper)
        # b_ref : (1, vocab_p)     f32 resident bias
        # o_ref : (TM, TN)         log_softmax output tile (written in phase 1 only)
        # m_ref : (TM, 1)          f32 running max      (VMEM scratch)
        # l_ref : (TM, 1)          f32 running sum(exp) (VMEM scratch)
        # s_ref : (TM, vocab_p)    logits stash          (VMEM scratch, stash path only)
        p = pl.program_id(1)   # phase: 0 = accumulate lse (and stash), 1 = write output
        k = pl.program_id(2)   # vocab tile index
        tn = o_ref.shape[1]
        off = pl.multiple_of(k * tn, 128)

        @pl.when((p == 0) & (k == 0))
        def _init():
            m_ref[...] = jnp.full(m_ref.shape, -jnp.inf, dtype=m_ref.dtype)
            l_ref[...] = jnp.zeros(l_ref.shape, dtype=l_ref.dtype)

        if use_stash:
            s_ref = maybe_stash[0]

            @pl.when(p == 0)
            def _accumulate():
                # Single (M,K)x(K,N) MXU matmul per (row tile, vocab tile).
                logits = jnp.dot(x_ref[...], w_ref[...],
                                 preferred_element_type=jnp.float32)
                logits = logits + b_ref[:, pl.ds(off, tn)]
                # Online (flash-style) max / logsumexp update in f32.
                m_prev = m_ref[...]
                m_new = jnp.maximum(m_prev, jnp.max(logits, axis=-1, keepdims=True))
                l_ref[...] = (l_ref[...] * jnp.exp(m_prev - m_new)
                              + jnp.sum(jnp.exp(logits - m_new), axis=-1, keepdims=True))
                m_ref[...] = m_new
                # Stash the raw logits so phase 1 never reruns the matmul or
                # re-streams the weight from HBM.
                s_ref[:, pl.ds(off, tn)] = logits.astype(s_ref.dtype)

            @pl.when(p == 1)
            def _finalize():
                lse = m_ref[...] + jnp.log(l_ref[...])
                logits = s_ref[:, pl.ds(off, tn)].astype(jnp.float32)
                o_ref[...] = (logits - lse).astype(o_ref.dtype)

        else:
            # Fallback for vocabularies too large for a VMEM stash: recompute the
            # logits tile in phase 1 (weight is streamed twice).
            # TODO(synk): for very large vocab, replace this recompute fallback with an
            # HBM logits intermediate + a cheap second elementwise (logits - lse) pass.
            logits = jnp.dot(x_ref[...], w_ref[...],
                             preferred_element_type=jnp.float32)
            logits = logits + b_ref[:, pl.ds(off, tn)]

            @pl.when(p == 0)
            def _accumulate():
                m_prev = m_ref[...]
                m_new = jnp.maximum(m_prev, jnp.max(logits, axis=-1, keepdims=True))
                l_ref[...] = (l_ref[...] * jnp.exp(m_prev - m_new)
                              + jnp.sum(jnp.exp(logits - m_new), axis=-1, keepdims=True))
                m_ref[...] = m_new

            @pl.when(p == 1)
            def _finalize():
                lse = m_ref[...] + jnp.log(l_ref[...])
                o_ref[...] = (logits - lse).astype(o_ref.dtype)

    return kernel


def generator_forward(x, weight, bias, *, tm=512, tn=512,
                      compute_dtype=jnp.bfloat16, out_dtype=jnp.bfloat16,
                      use_stash=None):
    """log_softmax(x @ weight.T + bias, axis=-1).

    x:      [B, S, d_model]
    weight: [vocab, d_model]   (torch nn.Linear layout; transposed once here)
    bias:   [vocab]

    tm: row tile.   Default 512 (multiple of 256, good for v5e/v6e/v7x); it is
        the main weight-reuse lever (arithmetic intensity ~ TM flops/weight byte).
    tn: vocab tile. Default 512 (multiple of 256 -> matches v6e/v7x 2x256 MXU).
    use_stash: None = auto (stash logits in VMEM when they fit the per-generation
        VMEM budget); True/False forces the variant.
    """
    B, S, d_model = x.shape
    vocab, d_model_w = weight.shape
    assert d_model_w == d_model

    rows = B * S
    # Clamp tiles for small problems; bf16 native tiling is (16, 128).
    tm = min(tm, _round_up(rows, 16))
    tn = min(tn, _round_up(vocab, 128))
    # v7x has 2 TensorCores; give the 'parallel' row axis >= 2 tiles when the
    # problem is big enough to care (keeps both cores busy; no-op on v5e/v6e).
    if rows >= 512 and _cdiv(rows, tm) < 2:
        tm = _round_up(_cdiv(rows, 2), 256)

    rows_p = _round_up(rows, tm)
    vocab_p = _round_up(vocab, tn)
    n_row_tiles = rows_p // tm
    n_vocab_tiles = vocab_p // tn

    # bf16 matmul operands (f32 accumulation on the MXU); f32 bias.
    x2d = x.reshape(rows, d_model).astype(compute_dtype)
    # One-time wrapper transpose to (d_model, vocab): every kernel-side dot is a
    # plain (M,K)x(K,N) MXU matmul (no per-tile XLU transpose of the weight).
    wT = weight.astype(compute_dtype).T
    b = bias.astype(jnp.float32)

    # Pad rows (zero rows -> valid but discarded log-probs) and vocab
    # (zero weight cols + very negative f32 bias -> exp underflows to 0, so the
    # padded columns never perturb the real logsumexp).
    if rows_p != rows:
        x2d = jnp.pad(x2d, ((0, rows_p - rows), (0, 0)))
    if vocab_p != vocab:
        wT = jnp.pad(wT, ((0, 0), (0, vocab_p - vocab)))
        b = jnp.pad(b, ((0, vocab_p - vocab),), constant_values=-1e30)
    b2d = b.reshape(1, vocab_p)

    # ---- VMEM budgeting (per generation) ------------------------------------
    phys_vmem = 64 * 1024 * 1024  # conservative fallback = v7x per-TC VMEM
    try:
        phys_vmem = int(getattr(pltpu.get_tpu_info(), "vmem_capacity_bytes", phys_vmem))
    except Exception:
        pass
    budget = int(phys_vmem * 0.85)

    isz = lambda dt: jnp.dtype(dt).itemsize
    stash_dtype = (jnp.float32 if jnp.dtype(out_dtype) == jnp.dtype(jnp.float32)
                   else jnp.bfloat16)
    base_bytes = (2 * tm * d_model * isz(compute_dtype)    # x tile, double-buffered
                  + 2 * d_model * tn * isz(compute_dtype)  # weight tile, double-buffered
                  + 2 * vocab_p * 4                        # resident bias (conservative x2)
                  + 2 * tm * tn * isz(out_dtype)           # output tile, double-buffered
                  + 2 * tm * 4)                            # m / l scratch
    stash_bytes = tm * vocab_p * isz(stash_dtype)
    if use_stash is None:
        use_stash = base_bytes + stash_bytes <= budget
    needed = base_bytes + (stash_bytes if use_stash else 0)
    vmem_limit = int(min(budget, max(32 << 20, needed + (8 << 20))))

    # ---- Specs ---------------------------------------------------------------
    nk = n_vocab_tiles
    if use_stash:
        # Phase 1 only reads the stash; park the weight index on its last tile so
        # NO weight blocks are re-streamed from HBM during phase 1.
        w_index = lambda i, p, k: (0, (1 - p) * k + p * (nk - 1))
        scratch = [pltpu.VMEM((tm, 1), jnp.float32),        # running max
                   pltpu.VMEM((tm, 1), jnp.float32),        # running sum(exp)
                   pltpu.VMEM((tm, vocab_p), stash_dtype)]  # logits stash
    else:
        w_index = lambda i, p, k: (0, k)
        scratch = [pltpu.VMEM((tm, 1), jnp.float32),
                   pltpu.VMEM((tm, 1), jnp.float32)]

    grid = (n_row_tiles, 2, n_vocab_tiles)  # (rows, phase, vocab) - reduction last

    out2d = pl.pallas_call(
        _make_generator_kernel(use_stash),
        out_shape=jax.ShapeDtypeStruct((rows_p, vocab_p), out_dtype),
        grid_spec=pltpu.PrefetchScalarGridSpec(
            num_scalar_prefetch=0,
            grid=grid,
            in_specs=[
                # Row tile: resident across phase & vocab axes.
                pl.BlockSpec((tm, d_model), lambda i, p, k: (i, 0)),
                # Weight tile, (d_model, vocab) layout, tiled on vocab.
                pl.BlockSpec((d_model, tn), w_index),
                # Bias: resident (1, vocab_p) block, sliced in-kernel with pl.ds.
                pl.BlockSpec((1, vocab_p), lambda i, p, k: (0, 0)),
            ],
            # Phase 0 parks the output on block (i, 0) (never written there);
            # Pallas only flushes an output block on index change, and block
            # (i, 0) is fully written at (p=1, k=0) before any such change.
            out_specs=pl.BlockSpec((tm, tn), lambda i, p, k: (i, p * k)),
            scratch_shapes=scratch,
        ),
        compiler_params=pltpu.CompilerParams(
            dimension_semantics=("parallel", "arbitrary", "arbitrary"),
            vmem_limit_bytes=vmem_limit,
        ),
    )(x2d, wT, b2d)

    return out2d[:rows, :vocab].reshape(B, S, vocab)


if __name__ == "__main__":
    key = jax.random.PRNGKey(0)
    kx, kw, kb, kx2 = jax.random.split(key, 4)

    # Small shapes consistent with the module: [batch, seq, d_model] -> [batch, seq, vocab].
    # Non-multiples (S=7, vocab=1000) exercise padding; vocab > tn exercises the
    # tiled two-pass log-softmax.
    B, S, d_model, vocab = 2, 7, 32, 1000

    x = jax.random.normal(kx, (B, S, d_model), dtype=jnp.float32)
    bound = 1.0 / math.sqrt(d_model)  # deterministic init mimicking nn.Linear
    weight = jax.random.uniform(kw, (vocab, d_model), jnp.float32, -bound, bound)
    bias = jax.random.uniform(kb, (vocab,), jnp.float32, -bound, bound)

    # Pure-JAX reference using the same bf16-rounded matmul operands the kernel sees.
    xr = x.astype(jnp.bfloat16).astype(jnp.float32)
    wr = weight.astype(jnp.bfloat16).astype(jnp.float32)
    ref = jax.nn.log_softmax(xr @ wr.T + bias, axis=-1)

    # 1) f32-output path (VMEM logits stash, f32 stash): tight check of the math.
    out_f32 = jax.block_until_ready(
        generator_forward(x, weight, bias, tn=256, out_dtype=jnp.float32))
    assert out_f32.shape == (B, S, vocab)
    err = float(jnp.max(jnp.abs(out_f32 - ref)))
    assert err < 2e-3, f"f32 stash path max abs err {err}"

    # 2) Forced recompute fallback (what a huge-vocab problem would take): same math.
    out_rc = jax.block_until_ready(
        generator_forward(x, weight, bias, tn=256, out_dtype=jnp.float32,
                          use_stash=False))
    err = float(jnp.max(jnp.abs(out_rc - ref)))
    assert err < 2e-3, f"f32 recompute path max abs err {err}"

    # 3) Default bf16-output path (bf16 stash, halves output writeback).
    out_bf16 = jax.block_until_ready(
        generator_forward(x, weight, bias, tn=256))
    assert out_bf16.dtype == jnp.bfloat16
    err = float(jnp.max(jnp.abs(out_bf16.astype(jnp.float32) - ref)))
    assert err < 8e-2, f"bf16 path max abs err {err}"

    # 4) Multi-row-tile path (3 row tiles, 4 vocab tiles): exercises per-row-tile
    #    scratch re-init and the parked-output-block flush across row tiles.
    B2, S2 = 4, 37
    x2 = jax.random.normal(kx2, (B2, S2, d_model), dtype=jnp.float32)
    ref2 = jax.nn.log_softmax(
        x2.astype(jnp.bfloat16).astype(jnp.float32) @ wr.T + bias, axis=-1)
    out2 = jax.block_until_ready(
        generator_forward(x2, weight, bias, tm=64, tn=256, out_dtype=jnp.float32))
    err = float(jnp.max(jnp.abs(out2 - ref2)))
    assert err < 2e-3, f"multi-row-tile path max abs err {err}"

    print("KERNEL_OK")
</pallas_src>

<mosaic_0001>
module attributes {stable_mosaic.version = 11 : i64} {
  func.func @kernel(%arg0: i32, %arg1: i32, %arg2: i32, %arg3: memref<16x32xbf16, #tpu.memory_space<vmem>>, %arg4: memref<32x256xbf16, #tpu.memory_space<vmem>>, %arg5: memref<1x1024xf32, #tpu.memory_space<vmem>>, %arg6: memref<16x256xf32, #tpu.memory_space<vmem>>, %arg7: memref<16x1xf32, #tpu.memory_space<vmem>>, %arg8: memref<16x1xf32, #tpu.memory_space<vmem>>, %arg9: memref<16x1024xf32, #tpu.memory_space<vmem>>) attributes {dimension_semantics = [#tpu.dimension_semantics<parallel>, #tpu.dimension_semantics<arbitrary>, #tpu.dimension_semantics<arbitrary>], iteration_bounds = array<i64: 1, 2, 4>, scalar_prefetch = 0 : i64, scratch_operands = 3 : i64, tpu.core_type = #tpu.core_type<tc>, window_params = [{transform_indices = @transform_0, window_bounds = array<i64: 16, 32>}, {transform_indices = @transform_1, window_bounds = array<i64: 32, 256>}, {pipeline_mode = #tpu.pipeline_mode<synchronous>, transform_indices = @transform_2, window_bounds = array<i64: 1, 1024>}, {transform_indices = @transform_3, window_bounds = array<i64: 16, 256>}]} {
    %c256_i32 = arith.constant 256 : i32
    %0 = arith.muli %arg2, %c256_i32 : i32
    %1 = tpu.assume_multiple %0, 128 : i32
    %c0_i32 = arith.constant 0 : i32
    %2 = arith.cmpi eq, %arg1, %c0_i32 : i32
    %c0_i32_0 = arith.constant 0 : i32
    %3 = arith.cmpi eq, %arg2, %c0_i32_0 : i32
    %4 = arith.andi %2, %3 : i1
    %5 = arith.extui %4 : i1 to i32
    %c0_i32_1 = arith.constant 0 : i32
    %6 = arith.cmpi ne, %5, %c0_i32_1 : i32
    scf.if %6 {
      %cst = arith.constant 0xFF800000 : f32
      %13 = vector.broadcast %cst : f32 to vector<16x1xf32>
      %c0 = arith.constant 0 : index
      %c0_5 = arith.constant 0 : index
      %14 = vector.load %arg7[%c0, %c0_5] : memref<16x1xf32, #tpu.memory_space<vmem>>, vector<16x1xf32>
      tpu.vector_store %arg7[%c0, %c0_5], %13 {strides = array<i32>} : memref<16x1xf32, #tpu.memory_space<vmem>>, vector<16x1xf32>,
      %cst_6 = arith.constant 0.000000e+00 : f32
      %15 = vector.broadcast %cst_6 : f32 to vector<16x1xf32>
      %c0_7 = arith.constant 0 : index
      %c0_8 = arith.constant 0 : index
      %16 = vector.load %arg8[%c0_7, %c0_8] : memref<16x1xf32, #tpu.memory_space<vmem>>, vector<16x1xf32>
      tpu.vector_store %arg8[%c0_7, %c0_8], %15 {strides = array<i32>} : memref<16x1xf32, #tpu.memory_space<vmem>>, vector<16x1xf32>,
    } else {
    }
    %c0_i32_2 = arith.constant 0 : i32
    %7 = arith.cmpi eq, %arg1, %c0_i32_2 : i32
    %8 = arith.extui %7 : i1 to i32
    %c0_i32_3 = arith.constant 0 : i32
    %9 = arith.cmpi ne, %8, %c0_i32_3 : i32
    scf.if %9 {
      %c0 = arith.constant 0 : index
      %c0_5 = arith.constant 0 : index
      %13 = vector.load %arg3[%c0, %c0_5] : memref<16x32xbf16, #tpu.memory_space<vmem>>, vector<16x32xbf16>
      %c0_6 = arith.constant 0 : index
      %c0_7 = arith.constant 0 : index
      %14 = vector.load %arg4[%c0_6, %c0_7] : memref<32x256xbf16, #tpu.memory_space<vmem>>, vector<32x256xbf16>
      %cst = arith.constant dense<0.000000e+00> : vector<16x256xf32>
      %15 = tpu.matmul %13, %14, %cst {dimension_numbers = #tpu.dot_dimension_numbers<[1], [0], [0], [1], [0, 0, 1, 1], [], []>} : vector<16x32xbf16>, vector<32x256xbf16>, vector<16x256xf32> -> vector<16x256xf32>
      %c0_8 = arith.constant 0 : index
      %16 = arith.index_cast %1 : i32 to index
      %17 = vector.load %arg5[%c0_8, %16] : memref<1x1024xf32, #tpu.memory_space<vmem>>, vector<1x256xf32>
      %18 = vector.broadcast %17 : vector<1x256xf32> to vector<16x256xf32>
      %19 = arith.addf %15, %18 : vector<16x256xf32>
      %c0_9 = arith.constant 0 : index
      %c0_10 = arith.constant 0 : index
      %20 = vector.load %arg7[%c0_9, %c0_10] : memref<16x1xf32, #tpu.memory_space<vmem>>, vector<16x1xf32>
      %cst_11 = arith.constant dense<0xFF800000> : vector<16xf32>
      %21 = vector.multi_reduction <maximumf>, %19, %cst_11 [1] : vector<16x256xf32> to vector<16xf32>
      %22 = vector.shape_cast %21 : vector<16xf32> to vector<16x1xf32>
      %23 = arith.maximumf %20, %22 : vector<16x1xf32>
      %c0_12 = arith.constant 0 : index
      %c0_13 = arith.constant 0 : index
      %24 = vector.load %arg8[%c0_12, %c0_13] : memref<16x1xf32, #tpu.memory_space<vmem>>, vector<16x1xf32>
      %25 = arith.subf %20, %23 : vector<16x1xf32>
      %26 = math.exp %25 : vector<16x1xf32>
      %27 = arith.mulf %24, %26 : vector<16x1xf32>
      %28 = vector.broadcast %23 : vector<16x1xf32> to vector<16x256xf32>
      %29 = arith.subf %19, %28 : vector<16x256xf32>
      %30 = math.exp %29 : vector<16x256xf32>
      %cst_14 = arith.constant dense<0.000000e+00> : vector<16xf32>
      %31 = vector.multi_reduction <add>, %30, %cst_14 [1] : vector<16x256xf32> to vector<16xf32>
      %32 = vector.shape_cast %31 : vector<16xf32> to vector<16x1xf32>
      %33 = arith.addf %27, %32 : vector<16x1xf32>
      %c0_15 = arith.constant 0 : index
      %c0_16 = arith.constant 0 : index
      %34 = vector.load %arg8[%c0_15, %c0_16] : memref<16x1xf32, #tpu.memory_space<vmem>>, vector<16x1xf32>
      tpu.vector_store %arg8[%c0_15, %c0_16], %33 {strides = array<i32>} : memref<16x1xf32, #tpu.memory_space<vmem>>, vector<16x1xf32>,
      %c0_17 = arith.constant 0 : index
      %c0_18 = arith.constant 0 : index
      %35 = vector.load %arg7[%c0_17, %c0_18] : memref<16x1xf32, #tpu.memory_space<vmem>>, vector<16x1xf32>
      tpu.vector_store %arg7[%c0_17, %c0_18], %23 {strides = array<i32>} : memref<16x1xf32, #tpu.memory_space<vmem>>, vector<16x1xf32>,
      %c0_19 = arith.constant 0 : index
      %36 = arith.index_cast %1 : i32 to index
      %37 = vector.load %arg9[%c0_19, %36] : memref<16x1024xf32, #tpu.memory_space<vmem>>, vector<16x256xf32>
      tpu.vector_store %arg9[%c0_19, %36], %19 {strides = array<i32>} : memref<16x1024xf32, #tpu.memory_space<vmem>>, vector<16x256xf32>,
    } else {
    }
    %c1_i32 = arith.constant 1 : i32
    %10 = arith.cmpi eq, %arg1, %c1_i32 : i32
    %11 = arith.extui %10 : i1 to i32
    %c0_i32_4 = arith.constant 0 : i32
    %12 = arith.cmpi ne, %11, %c0_i32_4 : i32
    scf.if %12 {
      %c0 = arith.constant 0 : index
      %c0_5 = arith.constant 0 : index
      %13 = vector.load %arg7[%c0, %c0_5] : memref<16x1xf32, #tpu.memory_space<vmem>>, vector<16x1xf32>
      %c0_6 = arith.constant 0 : index
      %c0_7 = arith.constant 0 : index
      %14 = vector.load %arg8[%c0_6, %c0_7] : memref<16x1xf32, #tpu.memory_space<vmem>>, vector<16x1xf32>
      %15 = math.log %14 : vector<16x1xf32>
      %16 = arith.addf %13, %15 : vector<16x1xf32>
      %c0_8 = arith.constant 0 : index
      %17 = arith.index_cast %1 : i32 to index
      %18 = vector.load %arg9[%c0_8, %17] : memref<16x1024xf32, #tpu.memory_space<vmem>>, vector<16x256xf32>
      %19 = vector.broadcast %16 : vector<16x1xf32> to vector<16x256xf32>
      %20 = arith.subf %18, %19 : vector<16x256xf32>
      %c0_9 = arith.constant 0 : index
      %c0_10 = arith.constant 0 : index
      %21 = vector.load %arg6[%c0_9, %c0_10] : memref<16x256xf32, #tpu.memory_space<vmem>>, vector<16x256xf32>
      tpu.vector_store %arg6[%c0_9, %c0_10], %20 {strides = array<i32>} : memref<16x256xf32, #tpu.memory_space<vmem>>, vector<16x256xf32>,
    } else {
    }
    return
  }
  func.func @transform_0(%arg0: i32, %arg1: i32, %arg2: i32) -> (i32, i32) {
    %c0_i32 = arith.constant 0 : i32
    %c0_i32_0 = arith.constant 0 : i32
    return %arg0, %c0_i32 : i32, i32
  }
  func.func @transform_1(%arg0: i32, %arg1: i32, %arg2: i32) -> (i32, i32) {
    %c1_i32 = arith.constant 1 : i32
    %0 = arith.subi %c1_i32, %arg1 : i32
    %1 = arith.muli %0, %arg2 : i32
    %c3_i32 = arith.constant 3 : i32
    %2 = arith.muli %arg1, %c3_i32 : i32
    %3 = arith.addi %1, %2 : i32
    %c0_i32 = arith.constant 0 : i32
    %c0_i32_0 = arith.constant 0 : i32
    return %c0_i32, %3 : i32, i32
  }
  func.func @transform_2(%arg0: i32, %arg1: i32, %arg2: i32) -> (i32, i32) {
    %c0_i32 = arith.constant 0 : i32
    %c0_i32_0 = arith.constant 0 : i32
    %c0_i32_1 = arith.constant 0 : i32
    return %c0_i32, %c0_i32_0 : i32, i32
  }
  func.func @transform_3(%arg0: i32, %arg1: i32, %arg2: i32) -> (i32, i32) {
    %0 = arith.muli %arg1, %arg2 : i32
    %c0_i32 = arith.constant 0 : i32
    return %arg0, %0 : i32, i32
  }
}

</mosaic_0001>

<bundles_post_ra>
// kernel: tpu_custom_call.1
= control target key start
LH: loop header
LB: loop body
LE: loop exit
PB: predicated region body
PF: predicated region fallthrough
CT: control target
= control target key end

     0   :  { %s1331_s0 = inlined_call_operand.hbm [shape: bf16[16,32], index: 0, kind: input, shape index: {}]   ;;  %s1332_s1 = inlined_call_operand.hbm [shape: bf16[32,1024], index: 1, kind: input, shape index: {}]   ;;  %s1333_s2 = inlined_call_operand.hbm [shape: f32[1,1024], index: 2, kind: input, shape index: {}]   ;;  %s1334_s3 = inlined_call_operand.hbm [shape: f32[16,1024], index: 3, kind: output, shape index: {}]  }
   0x1   :  { %1349 = sst [smem:[#allocation26_spill]] %s1333_s2 }
   0x2   :  { %1350 = sst [smem:[#allocation27_spill]] %s1334_s3 }
   0x3   :  { %8 = vsyncpa [#allocation6], 0 }
   0x4   :  { %9 = vsyncpa [#allocation9], 0 }
   0x5   :  { %11 = vsyncpa [#allocation9 + $0x1], 0 }
   0x6   :  { %12 = vsyncpa [#allocation7], 0 }
   0x7   :  { %14 = vsyncpa [#allocation7 + $0x1], 0  ;;  %s1055_s12 = smov 0   ;;  %s1057_s13 = smov 0  }
   0x8   :  { %s1059_s14 = smov 0   ;;  %s1061_s15 = smov 0  }
   0x9   :  { %s1063_s16 = smov 0   ;;  %s1065_s17 = smov 0  }
   0xa   :  { %s1067_s18 = smov 0   ;;  %s1069_s19 = smov 0  }
   0xb   :  { %s1071_s20 = smov 0   ;;  %s1073_s21 = smov 0  }
   0xc   :  { %s1075_s22 = smov 0  }
   0xd LB: > { %1351 = sst [smem:[#allocation16_spill]] %s977_s12  ;;  %s1109_s23 = sadd.s32 4294967295, %s1017_s22   ;;  %s1017_s22 = sphi %s1075_s22, %s20_s22   ;;  %s1013_s21 = sphi %s1073_s21, %s1401_s21   ;;  %s1009_s20 = sphi %s1071_s20, %s1400_s20   ;;  %s1005_s19 = sphi %s1069_s19, %s1399_s19   ;;  %s1001_s18 = sphi %s1067_s18, %s1398_s18   ;;  %s997_s17 = sphi %s1065_s17, %s1397_s17   ;;  %s993_s16 = sphi %s1063_s16, %s1396_s16   ;;  %s989_s15 = sphi %s1061_s15, %s1395_s15   ;;  %s985_s14 = sphi %s1059_s14, %s1394_s14   ;;  %s981_s13 = sphi %s1057_s13, %s1393_s13   ;;  %s977_s12 = sphi %s1055_s12, %s1392_s12  }
   0xe   : > { %1352 = sst [smem:[#allocation17_spill]] %s981_s13  ;;  %s617_s24 = sadd.s32 4294967294, %s1017_s22  }
   0xf   : > { %1353 = sst [smem:[#allocation18_spill]] %s985_s14  ;;  %s32_s25 = sadd.s32 1, %s1009_s20 }
  0x10   : > { %1354 = sst [smem:[#allocation19_spill]] %s993_s16  ;;  %s35_s26 = sadd.s32 1, %s1013_s21 }
  0x11   : > { %1355 = sst [smem:[#allocation20_spill]] %s1001_s18  ;;  %p33_p0 = scmp.ge.s32.totalorder %s32_s25, 4 }
  0x12   : > { %1356 = sst [smem:[#allocation21_spill]] %s1005_s19  ;;  %p87_p1 = scmp.ne.s32.totalorder %s997_s17, %s993_s16 }
  0x13   : > { %p88_p2 = scmp.eq.s32.totalorder %s1017_s22, 0  ;;  %s1403_s25 = smov (%p33_p0, %s32_s25), 0 }
  0x14   : > { %s1405_s26 = smov (!%p33_p0, %s35_s26), %s1013_s21  ;;  %p93_p4 = scmp.ne.s32.totalorder %s993_s16, %s989_s15 }
  0x15   : > { %p1121_p3 = por %p88_p2, %p87_p1  ;;  %p37_p5 = scmp.ge.s32.totalorder %s1405_s26, 2 }
  0x16   : > { %p1335_p6 = scmp.eq.s32.totalorder %s1109_s23, 0  ;;  %s124_s29 = smul.u32 %s1009_s20, %s1013_s21 }
  0x17   : > { %s131_s30 = sadd.s32 1, %s985_s14  ;;  %s1407_s26 = smov (%p37_p5, %s1405_s26), 0 }
  0x18   : > { %p1134_p7 = por %p1335_p6, %p93_p4  ;;  %p141_p8 = scmp.ne.s32.totalorder %s985_s14, %s981_s13 }
  0x19   : > { %s125_s5 = smul.u32 %s1407_s26, %s1403_s25  ;;  %p142_p9 = scmp.eq.s32.totalorder %s1109_s23, 7 }
  0x1a   : > { %s1358_s4 = scalar_select %p1134_p7, 1, 0 }
  0x1b   : > { %p147_p10 = scmp.ne.s32.totalorder %s981_s13, %s977_s12  ;;  %p148_p11 = scmp.eq.s32.totalorder %s617_s24, 7 }
  0x1c   : > { %1359 = sst [smem:[#allocation22_spill]] %s1358_s4  ;;  %s127_s6 = ssub.s32 %s124_s29, %s125_s5 }
  0x1d   : > { %p1145_p12 = por %p142_p9, %p141_p8  ;;  %p129_p13 = scmp.eq.s32.totalorder %s127_s6, 0 }
  0x1e   : > { %p1149_p0 = por %p148_p11, %p147_p10  ;;  %p618_p1 = scmp.ge.s32.totalorder %s1017_s22, 1 }
  0x1f   : > { %s1360_s7 = scalar_select %p1145_p12, 1, 0 }
  0x20   : > { %s1362_s8 = scalar_select %p1149_p0, 1, 0 }
  0x21   : > { %1361 = sst [smem:[#allocation23_spill]] %s1360_s7  ;;  %p155_p2 = scmp.lt.s32.totalorder %s1017_s22, 9 }
  0x22   : > { %1363 = sst [smem:[#allocation24_spill]] %s1362_s8  ;;  %s1019_s11 = smov [#allocation10]  }
  0x23   : > { %s1156_s9 = scalar_select %p129_p13, %s985_s14, %s131_s30  }
  0x24   : > { %p1158_p4 = pnand %p618_p1, %p155_p2  ;;  %s184_s15 = sshll.u32 %s1019_s11, 4  ;;  %s185_s15 = int_to_ptr.vmem [resolvable:$true] %s184_s15 }
  0x25   : > { %1364 = sst [smem:[#allocation25_spill]] %s1156_s9  ;;  %p677_p8 = scmp.lt.s32.totalorder %s1017_s22, 8 }
  0x26   : > { %p660_p5 = pneg %p1158_p4  ;;  %s820_s30 = scalar_lea.vmem %s185_s15, 128 }
  0x27   : > { %p1173_p10 = pnand %p677_p8, %p1121_p3  ;;  %p821_p13 = scmp.ne.s32.totalorder %s185_s15, %s820_s30 }
  0x28   : > { %p1167_p9 = pnand %p660_p5, %p1335_p6  ;;  %p828_p0 = scmp.lt.s32.totalorder %s185_s15, %s185_s15 }
  0x29   : > { %p829_p5 = scmp.lt.s32.totalorder %s820_s30, %s820_s30 }
  0x2a   : > { %p811_p11 = pneg %p1167_p9 }
  0x2b   : > { %p830_p6 = por %p829_p5, %p828_p0 }
  0x2c   : > { %p823_p1 = pnand %p821_p13, %p811_p11 }
  0x2e   : > { %p824_p2 = pneg %p823_p1 }
  0x30   : > { %p831_p12 = pnand %p830_p6, %p824_p2 }
  0x32   : > { %834 = shalt.err (!%p831_p12)
}
  0x33   : > { %s1368_s2 = sld [smem:[#allocation26_spill]]  ;;  %s1020_s6 = smov [#allocation5]  }
  0x34   : > { %s170_s11 = sshll.u32 %s1020_s6, 4  ;;  %s69_s27 = ssub.s32 1, %s1013_s21  ;;  %s171_s11 = int_to_ptr.vmem [resolvable:$true] %s170_s11 }
  0x35   : > { %s846_s9 = scalar_lea.vmem %s171_s11, 128  ;;  %p854_p6 = scmp.lt.s32.totalorder %s171_s11, %s171_s11 }
  0x36   : > { %p847_p3 = scmp.ne.s32.totalorder %s171_s11, %s846_s9  ;;  %p855_p12 = scmp.lt.s32.totalorder %s846_s9, %s846_s9 }
  0x38   : > { %p849_p8 = pnand %p847_p3, %p811_p11  ;;  %p856_p13 = por %p855_p12, %p854_p6 }
  0x39   : > { %666 = dma.hbm_to_vmem [thread:$0]  (!%p1167_p9), %s1368_s2, 128, %s185_s15, [#allocation9]  }
  0x3a   : > { %p850_p0 = pneg %p849_p8 }
  0x3c   : > { %p857_p1 = pnand %p856_p13, %p850_p0 }
  0x3e   : > { %860 = shalt.err (!%p857_p1)
}
  0x3f   : > { %s1021_s30 = smov 64   ;;  %s1022_s15 = smov 4  }
  0x40   : > { %663 = dma.hbm_to_vmem [thread:$0]  (!%p1167_p9), %s1331_s0, 128, %s171_s11, [#allocation6], %s1021_s30, %s1021_s30, %s1022_s15  }
  0x41   : > { %s70_s6 = smul.u32 %s1009_s20, %s69_s27  ;;  %s73_s9 = ssub.s32 1, %s1407_s26 }
  0x42   : > { %s71_s2 = smul.u32 3, %s1013_s21  ;;  %s195_s14 = sand.u32 1, %s1017_s22  }
  0x43   : > { %s74_s8 = smul.u32 %s73_s9, %s1403_s25  ;;  %s197_s7 = sand.u32 1, %s997_s17  }
  0x44   : > { %s72_s12 = sadd.s32 %s71_s2, %s70_s6  ;;  %s75_s3 = smul.u32 3, %s1407_s26 }
  0x45   : > { %s646_s19 = sshll.u32 %s72_s12, 7  ;;  %s622_s13 = sshll.u32 %s197_s7, 5 }
  0x46   : > { %s76_s18 = sadd.s32 %s75_s3, %s74_s8  ;;  %s209_s11 = scalar_lea.hbm %s1332_s1, %s646_s19 }
  0x47   : > { %s77_s4 = ssub.s32 %s72_s12, %s76_s18  ;;  %s199_s27 = scalar_lea.vmem [#allocation8], %s622_s13 }
  0x48   : > { %p78_p11 = scmp.eq.s32.totalorder %s77_s4, 0  ;;  %s210_s30 = sshll.u32 %s199_s27, 4  ;;  %s211_s30 = int_to_ptr.vmem [resolvable:$true] %s210_s30 }
  0x49   : > { %s1369_s15 = sadd.s32 1, %s997_s17  ;;  %s196_s5 = scalar_lea.sflag [#allocation9], %s195_s14 }
  0x4a   : > { %s1209_s28 = scalar_select %p78_p11, %s997_s17, %s1369_s15  }
  0x4b   : > { %p863_p9 = pneg %p1173_p10  ;;  %s874_s2 = scalar_lea.vmem %s211_s30, 512 }
  0x4c   : > { %p875_p2 = scmp.ne.s32.totalorder %s211_s30, %s874_s2  ;;  %s1023_s3 = smov [#allocation8]  }
  0x4d   : > { %s879_s12 = sshll.u32 %s1023_s3, 4  ;;  %s880_s12 = int_to_ptr.vmem [resolvable:$false] %s879_s12 }
  0x4e   : > { %p877_p5 = pnand %p875_p2, %p863_p9  ;;  %s881_s18 = scalar_lea.vmem %s880_s12, 1024 }
  0x4f   : > { %p882_p8 = scmp.lt.s32.totalorder %s211_s30, %s880_s12  ;;  %p883_p0 = scmp.lt.s32.totalorder %s881_s18, %s874_s2 }
  0x50   : > { %p878_p3 = pneg %p877_p5 }
  0x51   : > { %p884_p6 = por %p883_p0, %p882_p8 }
  0x53   : > { %p885_p12 = pnand %p884_p6, %p878_p3 }
  0x55   : > { %888 = shalt.err (!%p885_p12)
}
  0x56   : > { %s1024_s13 = smov 512   ;;  %s1025_s16 = smov 128  }
  0x57   : > { %s1026_s19 = smov 8   ;;  %222 = sbr.rel (%p1158_p4) target bundleno = 971 (0x3cb), region = 32 }
  0x58   : > { %670 = dma.hbm_to_vmem [thread:$0]  (!%p1173_p10), %s209_s11, 512, %s211_s30, %s196_s5, %s1024_s13, %s1025_s16, %s1026_s19  }
  0x59   : > { %p1370_p13 = scmp.eq.s32.totalorder (!%p1158_p4), %s1109_s23, 0 }
  0x5c   : > { %960 = dma.done.wait (%p1370_p13), [#allocation6], 128   ;;  %p1371_p1 = pmov %p1370_p13 }
  0x5d   : > { %s1372_s14 = sld [smem:[#allocation19_spill]]  ;;  %s228_s7 = sand.u32 1, %s1109_s23  }
  0x5e   : > { %962 = vsyncadd (%p1371_p1), [#allocation6], 4294967168  ;;  %s229_s9 = scalar_lea.sflag [#allocation9], %s228_s7 }
  0x63   : > { %s230_s8 = sand.u32 1, %s1372_s14  }
  0x64   : > { %s627_s6 = sshll.u32 %s230_s8, 5 }
  0x65   : > { %s1223_s24 = scalar_lea.vmem [#allocation8], %s627_s6 }
  0x66   : > { %964 = dma.done.wait (%p1134_p7), %s229_s9, 512  }
  0x67   : > { %966 = vsyncadd (%p1134_p7), %s229_s9, 4294966784  ;;  %p1374_p4 = pmov %p1371_p1 }
  0x68   : > { %p1375_p10 = pmov %p1371_p1 }
  0x69   : > { %968 = dma.done.wait (%p1374_p4), [#allocation9], 128  }
  0x6a   : > { %970 = vsyncadd (%p1375_p10), [#allocation9], 4294967168  ;;  %s1376_s10 = sld [smem:[#allocation17_spill]] }
  0x6b   : > { %s1377_s29 = sld [smem:[#allocation20_spill]] }
  0x6c   : > { %s1378_s11 = sld [smem:[#allocation21_spill]] }
  0x70   : > { %s256_s27 = sand.u32 1, %s1376_s10  }
  0x71   : > { %s630_s30 = sshll.u32 %s1377_s29, 8  ;;  %s629_s15 = sshll.u32 %s256_s27, 5 }
  0x72   : > { %p270_p11 = scmp.eq.s32.totalorder %s1378_s11, 0  ;;  %p271_p9 = scmp.eq.s32.totalorder %s1377_s29, 0 }
  0x73   : > { %s1239_s5 = scalar_lea.vmem [#allocation11], %s629_s15 }
  0x74   : > { %p272_p2 = pnand %p271_p9, %p270_p11 }
  0x76   : > { %275 = sbr.rel (%p272_p2) target bundleno = 126 (0x7e), region = 48 }
  0x7b   : > { %vm276_vm0 = vcmask 7168   ;;  %v1027_v0 = vmov -inf   ;;  %v1028_v1 = vmov 0.0  }
  0x7c   : > { %277 = vst.msk [vmem:[#allocation2] sm:$0xff] %vm276_vm0, %v1027_v0  ;;  %278 = vst.msk [vmem:[#allocation2 + $0x8] sm:$0xff] %vm276_vm0, %v1027_v0 }
  0x7d   : > { %279 = vst.msk [vmem:[#allocation3] sm:$0xff] %vm276_vm0, %v1028_v1  ;;  %280 = vst.msk [vmem:[#allocation3 + $0x8] sm:$0xff] %vm276_vm0, %v1028_v1 }
  0x7e PF: > { %s1379_s23 = sld [smem:[#allocation21_spill]] }
  0x84   : > { %p631_p7 = scmp.ne.s32.totalorder %s1379_s23, 0 }
  0x85   : > { %s290_s3 = sshra.s32 (!%p631_p7), %s630_s30, 7 }
  0x86   : > { %283 = sbr.rel (%p631_p7) target bundleno = 778 (0x30a), region = 52  ;;  %s292_s12 = scalar_lea.vmem (!%p631_p7), [#allocation10], %s290_s3 }
  0x87   : > { %s638_s18 = sshll.u32 (!%p631_p7), %s290_s3, 3 }
  0x88   : > { %s433_s13 = scalar_lea.vmem (!%p631_p7), [#allocation4], %s638_s18 }
  0x8b   : > { %v785_v2 = vld [vmem:[%s1223_s24 + $0x14] ss:$8 sps:$4 sm:$0xff]   ;;  %v787_v3 = vld [vmem:[%s1223_s24 + $0x10] ss:$8 sps:$4 sm:$0xff]   ;;  %v1029_v4 = vmov 0   ;;  %vm330_vm1 = vcmask 261120   ;;  %v295_v8 = vlaneseq }
  0x8c   : > { %366 = vmatprep.mubr.bf16.mxu0 %v1029_v4  ;;  %783 = vset.pattern.permute.xlu1 %v1029_v4  ;;  %v788_v5 = vld [vmem:[%s1223_s24 + $0x4] ss:$8 sps:$4 sm:$0xff]   ;;  %v790_v6 = vld [vmem:[%s1223_s24] ss:$8 sps:$4 sm:$0xff]   ;;  %v791_v7 = vld [vmem:[#allocation5] sm:$0xff]   ;;  %vm427_vm2 = vcmask 7168  }
  0x8d   : > { %346 = vmatprep.subr.bf16.mxu0 %v785_v2  ;;  %784 = vset.pattern.permute.xlu0 %v1029_v4  ;;  %v296_v9 = vshrl.u32 %v295_v8, 7  ;;  %v293_v11 = vld [vmem:[%s292_s12] sm:$0x3]  ;;  %v378_v28 = vld [vmem:[#allocation2 + $0x8] sm:$0xff]  ;;  %v387_v52 = vld [vmem:[#allocation3] sm:$0xff] }
  0x8e   : > { %347 = vmatpush1.bf16.msra.mxu0 %v787_v3  ;;  %v377_v25 = vld [vmem:[#allocation2] sm:$0xff]  ;;  %v388_v56 = vld [vmem:[#allocation3 + $0x8] sm:$0xff] }
  0x8f   : > { %348 = vmatprep.subr.bf16.mxu0 %v788_v5  ;;  %v297_v10 = vsub.s32 0, %v296_v9  ;;  %v301_v12 = vsub.s32 1, %v296_v9 }
  0x91   : > { %v298_v13 = vrot.slane %v293_v11, %v297_v10  ;;  %v302_v14 = vrot.slane %v293_v11, %v301_v12 }
  0x92   : > { %349 = vmatpush1.bf16.msra.mxu0 %v790_v6 }
  0x95   : > { %637 = vmatmul.mubr.msk.bf16.vlgmr.msra.gmra.mxu0 %vm330_vm1, %v791_v7 }
 0x155   : > { %v368_v15 = vpop.f32.mrf.mxu0 }
 0x156   : > { %v369_v16 = vadd.f32 %v368_v15, %v298_v13 }
 0x157   : > { %v370_v17 = vpop.f32.mrf.mxu0 }
 0x158   : > { %434 = vst [vmem:[%s433_s13] sm:$0xff] %v369_v16  ;;  %v371_v18 = vadd.f32 %v370_v17, %v302_v14 }
 0x159   : > { %v372_v19 = vpop.f32.mrf.mxu0 }
 0x15a   : > { %435 = vst [vmem:[%s433_s13 + $0x8] sm:$0xff] %v371_v18  ;;  %v373_v20 = vadd.f32 %v372_v19, %v298_v13  ;;  %v379_v21 = vmax.f32 %v369_v16, %v371_v18 }
 0x15b   : > { %v374_v22 = vpop.f32.mrf.mxu0 }
 0x15c   : > { %436 = vst [vmem:[%s433_s13 + $0x40] sm:$0xff] %v373_v20  ;;  %v375_v23 = vadd.f32 %v374_v22, %v302_v14  ;;  %380 = vmax.xlane.f32.xlu0 %v379_v21 }
 0x15e   : > { %437 = vst [vmem:[%s433_s13 + $0x48] sm:$0xff] %v375_v23  ;;  %v382_v24 = vmax.f32 %v373_v20, %v375_v23 }
 0x160   : > { %383 = vmax.xlane.f32.xlu0 %v382_v24 }
 0x1e5   : > { %v381_v26 = vpop.xlane.xlu0 %380 }
 0x1e6   : > { %v385_v27 = vmax.f32 %v377_v25, %v381_v26 }
 0x1e8   : > { %v389_v29 = vsub.f32 %v377_v25, %v385_v27  ;;  %430 = vst.msk [vmem:[#allocation2] sm:$0xff] %vm427_vm2, %v385_v27  ;;  %399 = vperm.xlu1 %783, %v385_v27  }
 0x1e9   : > { %v384_v30 = vpop.xlane.xlu0 %383 }
 0x1ea   : > { %v386_v31 = vmax.f32 %v378_v28, %v384_v30  ;;  %v391_v49 = vmul.f32 1.442695, %v389_v29 }
 0x1ec   : > { %v390_v32 = vsub.f32 %v378_v28, %v386_v31  ;;  %431 = vst.msk [vmem:[#allocation2 + $0x8] sm:$0xff] %vm427_vm2, %v386_v31  ;;  %404 = vperm.xlu1 %783, %v386_v31  }
 0x1ee   : > { %v393_v50 = vmul.f32 1.442695, %v390_v32 }
 0x263   : > { %v400_v33 = vpop.permute.xlu1 %399 }
 0x264   : > { %v407_v34 = vsub.f32 %v369_v16, %v400_v33  ;;  %v408_v35 = vsub.f32 %v371_v18, %v400_v33 }
 0x266   : > { %v411_v36 = vmul.f32 1.442695, %v407_v34  ;;  %v413_v37 = vmul.f32 1.442695, %v408_v35 }
 0x267   : > { %v405_v38 = vpop.permute.xlu1 %404 }
 0x268   : > { %792 = vpow2.f32 %v411_v36  ;;  %v409_v39 = vsub.f32 %v373_v20, %v405_v38  ;;  %v410_v40 = vsub.f32 %v375_v23, %v405_v38 }
 0x269   : > { %794 = vpow2.f32 %v413_v37 }
 0x26a   : > { %v415_v41 = vmul.f32 1.442695, %v409_v39  ;;  %v417_v42 = vmul.f32 1.442695, %v410_v40 }
 0x26c   : > { %796 = vpow2.f32 %v415_v41 }
 0x26d   : > { %798 = vpow2.f32 %v417_v42 }
 0x26e   : > { %800 = vpow2.f32 %v391_v49 }
 0x26f   : > { %802 = vpow2.f32 %v393_v50 }
 0x275   : > { %v793_v43 = vpop.eup %792 }
 0x276   : > { %v795_v44 = vpop.eup %794 }
 0x277   : > { %v419_v45 = vadd.f32 %v795_v44, %v793_v43 }
 0x279   : > { %v797_v46 = vpop.eup %796  ;;  %420 = vadd.xlane.f32.xlu0 %v419_v45 }
 0x27a   : > { %v799_v47 = vpop.eup %798 }
 0x27b   : > { %v422_v48 = vadd.f32 %v799_v47, %v797_v46  ;;  %v801_v51 = vpop.eup %800 }
 0x27c   : > { %v395_v53 = vmul.f32 %v801_v51, %v387_v52  ;;  %v803_v54 = vpop.eup %802 }
 0x27d   : > { %423 = vadd.xlane.f32.xlu1 %v422_v48  ;;  %v396_v58 = vmul.f32 %v803_v54, %v388_v56 }
 0x302   : > { %v421_v55 = vpop.xlane.xlu0 %420 }
 0x303   : > { %v425_v57 = vadd.f32 %v421_v55, %v395_v53 }
 0x305   : > { %428 = vst.msk [vmem:[#allocation3] sm:$0xff] %vm427_vm2, %v425_v57 }
 0x306   : > { %v424_v59 = vpop.xlane.xlu1 %423 }
 0x307   : > { %v426_v60 = vadd.f32 %v424_v59, %v396_v58 }
 0x309   : > { %429 = vst.msk [vmem:[#allocation3 + $0x8] sm:$0xff] %vm427_vm2, %v426_v60 }
 0x30a PF: > { %s1381_s16 = sld [smem:[#allocation21_spill]] }
 0x310   : > { %p639_p5 = scmp.ne.s32.totalorder %s1381_s16, 1 }
 0x311   : > { %s452_s14 = sshra.s32 (!%p639_p5), %s630_s30, 7 }
 0x312   : > { %441 = sbr.rel (%p639_p5) target bundleno = 941 (0x3ad), region = 56  ;;  %s640_s4 = sshll.u32 (!%p639_p5), %s452_s14, 3 }
 0x313   : > { %s455_s7 = scalar_lea.vmem (!%p639_p5), [#allocation4], %s640_s4 }
 0x317   : > { %v444_v61 = vld [vmem:[#allocation3] sm:$0xff]  ;;  %v1030_v62 = vmov 0   ;;  %v445_v63 = vld [vmem:[#allocation3 + $0x8] sm:$0xff]  ;;  %v442_v1 = vld [vmem:[#allocation2] sm:$0xff] }
 0x318   : > { %804 = vset.pattern.permute.xlu0 %v1030_v62  ;;  %805 = vlog2.f32 %v444_v61  ;;  %v443_v4 = vld [vmem:[#allocation2 + $0x8] sm:$0xff]  ;;  %v456_v8 = vld [vmem:[%s455_s7] sm:$0xff] }
 0x319   : > { %807 = vlog2.f32 %v445_v63  ;;  %v457_v9 = vld [vmem:[%s455_s7 + $0x8] sm:$0xff]  ;;  %v458_v13 = vld [vmem:[%s455_s7 + $0x40] sm:$0xff] }
 0x31a   : > { %v459_v14 = vld [vmem:[%s455_s7 + $0x48] sm:$0xff] }
 0x325   : > { %v806_v0 = vpop.eup %805 }
 0x326   : > { %v808_v2 = vpop.eup %807  ;;  %v447_v3 = vmul.f32 0.6931472, %v806_v0 }
 0x327   : > { %v449_v5 = vmul.f32 0.6931472, %v808_v2 }
 0x328   : > { %v450_v6 = vadd.f32 %v447_v3, %v442_v1 }
 0x329   : > { %v451_v7 = vadd.f32 %v449_v5, %v443_v4 }
 0x32a   : > { %462 = vperm.xlu0 %804, %v450_v6  }
 0x32e   : > { %467 = vperm.xlu0 %804, %v451_v7  }
 0x3a5   : > { %v463_v10 = vpop.permute.xlu0 %462 }
 0x3a6   : > { %v470_v11 = vsub.f32 %v456_v8, %v463_v10  ;;  %v471_v12 = vsub.f32 %v457_v9, %v463_v10 }
 0x3a8   : > { %474 = vst [vmem:[%s1239_s5] sm:$0xff] %v470_v11  ;;  %475 = vst [vmem:[%s1239_s5 + $0x8] sm:$0xff] %v471_v12 }
 0x3a9   : > { %v468_v15 = vpop.permute.xlu0 %467 }
 0x3aa   : > { %v472_v16 = vsub.f32 %v458_v13, %v468_v15  ;;  %v473_v17 = vsub.f32 %v459_v14, %v468_v15 }
 0x3ac   : > { %476 = vst [vmem:[%s1239_s5 + $0x10] sm:$0xff] %v472_v16  ;;  %477 = vst [vmem:[%s1239_s5 + $0x18] sm:$0xff] %v473_v17 }
 0x3ad PF: > { %s1383_s8 = sld [smem:[#allocation21_spill]]  ;;  %s496_s29 = sshll.u32 %s1239_s5, 4  ;;  %s1262_s29 = int_to_ptr.vmem [resolvable:$true] %s496_s29 }
 0x3ae   : > { %s1384_s6 = sld [smem:[#allocation20_spill]]  ;;  %s1271_s3 = scalar_lea.sflag [#allocation7], %s256_s27 }
 0x3af   : > { %s1386_s24 = sld [smem:[#allocation23_spill]]  ;;  %s889_s12 = scalar_lea.vmem %s1262_s29, 512 }
 0x3b0   : > { %s1387_s23 = sld [smem:[#allocation27_spill]]  ;;  %p890_p3 = scmp.ne.s32.totalorder %s1262_s29, %s889_s12 }
 0x3b1   : > { %s1031_s5 = smov [#allocation11]  }
 0x3b2   : > { %s893_s18 = sshll.u32 %s1031_s5, 4  ;;  %s894_s18 = int_to_ptr.vmem [resolvable:$false] %s893_s18 }
 0x3b3   : > { %s895_s13 = scalar_lea.vmem %s894_s18, 1024  ;;  %p896_p12 = scmp.lt.s32.totalorder %s1262_s29, %s894_s18 }
 0x3b4   : > { %s486_s10 = smul.u32 %s1384_s6, %s1383_s8  ;;  %p897_p13 = scmp.lt.s32.totalorder %s895_s13, %s889_s12 }
 0x3b5   : > { %p1388_p8 = scmp.ne.s32.totalorder %s1386_s24, 0 }
 0x3b6   : > { %s647_s11 = sshll.u32 %s486_s10, 8  ;;  %p898_p1 = por %p897_p13, %p896_p12 }
 0x3b7   : > { %s1267_s2 = scalar_lea.hbm %s1387_s23, %s647_s11  ;;  %p891_p0 = pnand %p890_p3, %p1388_p8 }
 0x3b9   : > { %p892_p6 = pneg %p891_p0 }
 0x3bb   : > { %p899_p4 = pnand %p898_p1, %p892_p6 }
 0x3bd   : > { %902 = shalt.err (!%p899_p4)
}
 0x3be   : > { %s903_s27 = scalar_lea.hbm %s1267_s2, 512  ;;  %s907_s14 = scalar_lea.hbm %s1387_s23, 2048 }
 0x3bf   : > { %p904_p10 = scmp.ne.s32.totalorder %s1267_s2, %s903_s27  ;;  %p908_p2 = scmp.lt.s32.totalorder %s1267_s2, %s1387_s23 }
 0x3c0   : > { %p909_p7 = scmp.lt.s32.totalorder %s907_s14, %s903_s27 }
 0x3c1   : > { %p905_p11 = pnand %p904_p10, %p1388_p8 }
 0x3c2   : > { %p910_p5 = por %p909_p7, %p908_p2 }
 0x3c3   : > { %p906_p9 = pneg %p905_p11 }
 0x3c5   : > { %p911_p3 = pnand %p910_p5, %p906_p9 }
 0x3c7   : > { %914 = shalt.err (!%p911_p3)
}
 0x3c8   : > { %s1032_s8 = smov 256   ;;  %s1033_s6 = smov 1024  }
 0x3c9   : > { %s1034_s9 = smov 16  }
 0x3ca   : > { %658 = dma.vmem_to_hbm [thread:$0]  (%p1388_p8), %s1262_s29, 512, %s1267_s2, %s1271_s3, %s1032_s8, %s1033_s6, %s1034_s9  }
 0x3cb PF: > { %s1389_s10 = sld [smem:[#allocation16_spill]]  ;;  %p680_p0 = scmp.ge.s32.totalorder %s1017_s22, 2 }
 0x3cc   : > { %s1390_s11 = sld [smem:[#allocation24_spill]] }
 0x3d1   : > { %s511_s30 = sand.u32 1, %s1389_s10  }
 0x3d2   : > { %p1391_p6 = scmp.ne.s32.totalorder %s1390_s11, 0  ;;  %s512_s15 = scalar_lea.sflag [#allocation7], %s511_s30 }
 0x3d4   : > { %p672_p12 = pnand %p680_p0, %p1391_p6 }
 0x3d6   : > { %p673_p13 = pneg %p672_p12 }
 0x3d8   : > { %972 = dma.done.wait (%p673_p13), %s512_s15, 512  }
 0x3d9   : > { %974 = vsyncadd (%p673_p13), %s512_s15, 4294966784  ;;  %s20_s22 = sadd.s32 1, %s1017_s22   ;;  %s1392_s12 = sld [smem:[#allocation17_spill]] }
 0x3da   : > { %p17_p1 = scmp.ge.s32.totalorder %s20_s22, 10   ;;  %s1393_s13 = sld [smem:[#allocation18_spill]] }
 0x3db   : > { %s1394_s14 = sld [smem:[#allocation25_spill]]  ;;  %s1396_s16 = smov %s997_s17 }
 0x3dc   : > { %s1395_s15 = sld [smem:[#allocation19_spill]]  ;;  %s1397_s17 = smov %s1209_s28 }
 0x3dd   : > { %s1398_s18 = smov %s1009_s20  ;;  %s1399_s19 = smov %s1013_s21 }
 0x3de   : > { %s1400_s20 = smov %s1403_s25  ;;  %s1401_s21 = smov %s1407_s26 }
 0x3df   :  { %19 = sbr.rel (!%p17_p1) target bundleno = 13 (0xd), region = 102 }
 0x3e4   :  { %517 = vsyncpa [#allocation6], 1 }
 0x3e5   :  { %519 = vsyncpa [#allocation6 + $0x1], 1 }
 0x3e6   :  { %520 = vsyncpa [#allocation9], 1 }
 0x3e7   :  { %522 = vsyncpa [#allocation9 + $0x1], 1 }
 0x3e8   :  { %523 = vsyncpa [#allocation7], 1 }
 0x3e9   :  { %525 = vsyncpa [#allocation7 + $0x1], 1 }

</bundles_post_ra>
